<compile_context>
chip_gen: v7x
topology: tpu7x:2x2x1
jax: 0.10.0
libtpu: 0.0.40
codegen_flags: <defaults>
</compile_context>

<pallas_src>
import functools

import jax
import jax.numpy as jnp
from jax import lax
from jax.experimental import pallas as pl
from jax.experimental.pallas import tpu as pltpu


def _pred_kernel(x_ref, x1_ref, q1_ref, q2_ref, w1_ref, w2_ref,
                 qn_ref, kvn_ref, q_ssq, kv_ssq):
    """One seq-tile of the fused q / k / v L2-norm reduction."""
    step = pl.program_id(0)
    f32 = jnp.float32

    @pl.when(step == 0)
    def _init():
        q_ssq[...] = jnp.zeros_like(q_ssq)
        kv_ssq[...] = jnp.zeros_like(kv_ssq)

    # ---- q path: F.linear(F.linear(x, q1), q2) == (x @ q1.T) @ q2.T --------
    # dot_general contracts the shared dim of the *untransposed* weights
    # (MXU trans_b), so no transposed weight copies are created per call.
    q = lax.dot_general(x_ref[...], q1_ref[...],
                        dimension_numbers=(((1,), (1,)), ((), ())),
                        preferred_element_type=f32)                        # (tS, R)
    q = lax.dot_general(q, q2_ref[...].astype(f32),
                        dimension_numbers=(((1,), (1,)), ((), ())),
                        preferred_element_type=f32)                        # (tS, H)
    q_ssq[...] += jnp.sum(q * q, axis=0, keepdims=True)

    # ---- kv path: torch.bmm(torch.bmm(x1, w1), w2); branch 0 = k, 1 = v ----
    kv0 = jnp.dot(x1_ref[0], w1_ref[0], preferred_element_type=f32)        # (tS, R)
    kv0 = jnp.dot(kv0, w2_ref[0].astype(f32), preferred_element_type=f32)  # (tS, Kv)
    kv1 = jnp.dot(x1_ref[1], w1_ref[1], preferred_element_type=f32)
    kv1 = jnp.dot(kv1, w2_ref[1].astype(f32), preferred_element_type=f32)
    kv_ssq[...] += jnp.concatenate(
        [jnp.sum(kv0 * kv0, axis=0, keepdims=True),
         jnp.sum(kv1 * kv1, axis=0, keepdims=True)], axis=0)               # (2, Kv)

    # ---- finalize on the last grid step only (accumulator pattern) ---------
    @pl.when(step == pl.num_programs(0) - 1)
    def _finalize():
        qn_ref[...] = jnp.sqrt(q_ssq[...])
        kvn_ref[...] = jnp.sqrt(kv_ssq[...])


def _vmem_limit_bytes() -> int:
    """Raise the scoped-VMEM limit above the 16/32 MiB defaults but stay
    inside v7x's 64 MiB physical VMEM (v5e/v6e have 128 MiB)."""
    try:
        cap = int(pltpu.get_tpu_info().vmem_capacity_bytes)
    except Exception:  # unknown chip / interpret mode: assume v7x-sized VMEM
        cap = 64 * 1024 * 1024
    return min(int(cap * 0.75), 100 * 1024 * 1024)


def _pick_seq_tile(S: int, H: int, Kv: int, itemsize: int, vmem_budget: int) -> int:
    """Largest seq tile whose double-buffered pipeline fits the VMEM budget."""
    # Per-seq-row bytes: double-buffered x (itemsize*H) and x1 (2*itemsize*H)
    # input tiles plus f32 intermediates for the q path (4H) and kv path (8Kv).
    per_row = 2 * (itemsize * H + 2 * itemsize * H) + 4 * H + 8 * Kv
    cap = max(16, (vmem_budget // 2) // per_row)   # 2x headroom: weights, outputs
    if S <= cap:
        return S                                   # single full-extent block (always legal)
    t = min(cap, 1024)                             # >1k rows: per-step overhead already amortized
    return max(16, t - (t % 16))                   # bf16 packs 16 rows per sublane group


@functools.partial(jax.jit, static_argnums=(2,), static_argnames=("compute_dtype",))
def qkvo_fused_gqa_predictor(x, x1, sparsity, params, *, compute_dtype=jnp.bfloat16):
    """Pallas equivalent of QKVOFusedGQAPredictor.forward (per_channel path)."""
    q1, q2, w1, w2 = params["q1"], params["q2"], params["w1"], params["w2"]
    S, H = x.shape
    R = q1.shape[0]
    Kv = w2.shape[-1]
    groups = H // Kv

    # bf16 operands halve HBM bytes for this bandwidth-bound kernel; all
    # accumulation / sqrt math stays f32 inside the kernel.
    x_c = x.astype(compute_dtype)
    x1_c = x1.astype(compute_dtype)
    q1_c = q1.astype(compute_dtype)      # (R, H)   used untransposed
    q2_c = q2.astype(compute_dtype)      # (H, R)   used untransposed
    w1_c = w1.astype(compute_dtype)      # (2, H, R)
    w2_c = w2.astype(compute_dtype)      # (2, R, Kv)

    vmem_limit = _vmem_limit_bytes()
    tS = _pick_seq_tile(S, H, Kv, jnp.dtype(compute_dtype).itemsize, vmem_limit)
    pad = (-S) % tS
    if pad:  # zero rows add 0 to the sum-of-squares, so seq padding is exact
        x_c = jnp.pad(x_c, ((0, pad), (0, 0)))
        x1_c = jnp.pad(x1_c, ((0, 0), (0, pad), (0, 0)))
    n_steps = (S + pad) // tS

    q_norm, kv_norm = pl.pallas_call(
        _pred_kernel,
        grid=(n_steps,),
        in_specs=[
            pl.BlockSpec((tS, H), lambda s: (s, 0)),           # x   (seq-tiled, pipelined)
            pl.BlockSpec((2, tS, H), lambda s: (0, s, 0)),     # x1  (seq-tiled, pipelined)
            pl.BlockSpec((R, H), lambda s: (0, 0)),            # q1  (VMEM-resident)
            pl.BlockSpec((H, R), lambda s: (0, 0)),            # q2  (VMEM-resident)
            pl.BlockSpec((2, H, R), lambda s: (0, 0, 0)),      # w1  (VMEM-resident)
            pl.BlockSpec((2, R, Kv), lambda s: (0, 0, 0)),     # w2  (VMEM-resident)
        ],
        out_specs=(
            pl.BlockSpec((1, H), lambda s: (0, 0)),            # ||q|| per hidden channel
            pl.BlockSpec((2, Kv), lambda s: (0, 0)),           # ||k||, ||v|| per kv channel
        ),
        out_shape=(
            jax.ShapeDtypeStruct((1, H), jnp.float32),
            jax.ShapeDtypeStruct((2, Kv), jnp.float32),
        ),
        scratch_shapes=[
            pltpu.VMEM((1, H), jnp.float32),    # q  sum-of-squares accumulator
            pltpu.VMEM((2, Kv), jnp.float32),   # kv sum-of-squares accumulator
        ],
        compiler_params=pltpu.CompilerParams(
            # Seq axis is the reduction (accumulators live across it).
            # TODO(synk): on v7x a second 'parallel' grid axis could feed the
            # second TensorCore, but splitting q/kv branches or output columns
            # would re-stream x/x1 from HBM and hurt this mem-bound kernel.
            dimension_semantics=("arbitrary",),
            vmem_limit_bytes=vmem_limit,
        ),
    )(x_c, x1_c, q1_c, q2_c, w1_c, w2_c)

    # ---- O(H) selection glue in JAX: GQA group mean, qk product, top-k -----
    q_norm = q_norm[0]                              # (H,)
    k_norm, v_norm = kv_norm[0], kv_norm[1]         # (Kv,), (Kv,)
    q_mean = q_norm.reshape(groups, Kv).mean(axis=0)   # == q.view(groups, kv).mean(0)
    qk = q_mean * k_norm

    tk = int(Kv * (1.0 - sparsity))                 # static: sparsity is static under jit
    k_idx = lax.top_k(qk, tk)[1]
    v_idx = lax.top_k(v_norm, tk)[1]
    # TODO(synk): torch.topk returns int64 indices and its tie-break order may
    # differ from lax.top_k; JAX indices here are int32.
    q_idx = (k_idx[:, None] * groups
             + jnp.arange(groups, dtype=k_idx.dtype)[None, :]).reshape(-1)
    return q_idx, k_idx, v_idx


if __name__ == "__main__":
    # Small shapes consistent with the module: hidden=32, kv=16 (-> 2 GQA
    # groups), rank=8, seq=8.
    H, Kv, R, S = 32, 16, 8, 8
    key = jax.random.PRNGKey(0)
    k1, k2, k3, k4, k5, k6 = jax.random.split(key, 6)

    params = {
        "w1": jax.random.normal(k1, (2, H, R), jnp.float32),   # torch.randn(2, hidden, rank)
        "w2": jax.random.normal(k2, (2, R, Kv), jnp.float32),  # torch.randn(2, rank, kv)
        "q1": jax.random.normal(k3, (R, H), jnp.float32),      # torch.randn(rank, hidden)
        "q2": jax.random.normal(k4, (H, R), jnp.float32),      # torch.randn(hidden, rank)
    }
    x = jax.random.normal(k5, (S, H), jnp.float32)
    x1 = jax.random.normal(k6, (2, S, H), jnp.float32)
    sparsity = 0.5

    q_idx, k_idx, v_idx = qkvo_fused_gqa_predictor(x, x1, sparsity, params)
    jax.block_until_ready((q_idx, k_idx, v_idx))

    # Basic shape sanity (mirrors the PyTorch return structure).
    groups = H // Kv
    tk = int(Kv * (1.0 - sparsity))
    assert k_idx.shape == (tk,)
    assert v_idx.shape == (tk,)
    assert q_idx.shape == (tk * groups,)

    print("KERNEL_OK")
</pallas_src>

<mosaic_0001>
module attributes {stable_mosaic.version = 11 : i64} {
  func.func @_pred_kernel(%arg0: i32, %arg1: memref<8x32xbf16, #tpu.memory_space<vmem>>, %arg2: memref<2x8x32xbf16, #tpu.memory_space<vmem>>, %arg3: memref<8x32xbf16, #tpu.memory_space<vmem>>, %arg4: memref<32x8xbf16, #tpu.memory_space<vmem>>, %arg5: memref<2x32x8xbf16, #tpu.memory_space<vmem>>, %arg6: memref<2x8x16xbf16, #tpu.memory_space<vmem>>, %arg7: memref<1x32xf32, #tpu.memory_space<vmem>>, %arg8: memref<2x16xf32, #tpu.memory_space<vmem>>, %arg9: memref<1x32xf32, #tpu.memory_space<vmem>>, %arg10: memref<2x16xf32, #tpu.memory_space<vmem>>) attributes {dimension_semantics = [#tpu.dimension_semantics<arbitrary>], iteration_bounds = array<i64: 1>, scalar_prefetch = 0 : i64, scratch_operands = 2 : i64, tpu.core_type = #tpu.core_type<tc>, window_params = [{transform_indices = @transform_0, window_bounds = array<i64: 8, 32>}, {transform_indices = @transform_1, window_bounds = array<i64: 2, 8, 32>}, {pipeline_mode = #tpu.pipeline_mode<synchronous>, transform_indices = @transform_2, window_bounds = array<i64: 8, 32>}, {pipeline_mode = #tpu.pipeline_mode<synchronous>, transform_indices = @transform_3, window_bounds = array<i64: 32, 8>}, {pipeline_mode = #tpu.pipeline_mode<synchronous>, transform_indices = @transform_4, window_bounds = array<i64: 2, 32, 8>}, {pipeline_mode = #tpu.pipeline_mode<synchronous>, transform_indices = @transform_5, window_bounds = array<i64: 2, 8, 16>}, {pipeline_mode = #tpu.pipeline_mode<synchronous>, transform_indices = @transform_6, window_bounds = array<i64: 1, 32>}, {pipeline_mode = #tpu.pipeline_mode<synchronous>, transform_indices = @transform_7, window_bounds = array<i64: 2, 16>}]} {
    %c0_i32 = arith.constant 0 : i32
    %0 = arith.cmpi eq, %arg0, %c0_i32 : i32
    %1 = arith.extui %0 : i1 to i32
    %c0_i32_0 = arith.constant 0 : i32
    %2 = arith.cmpi ne, %1, %c0_i32_0 : i32
    scf.if %2 {
      %cst_41 = arith.constant 0.000000e+00 : f32
      %46 = vector.broadcast %cst_41 : f32 to vector<1x32xf32>
      %c0_42 = arith.constant 0 : index
      %c0_43 = arith.constant 0 : index
      %47 = vector.load %arg9[%c0_42, %c0_43] : memref<1x32xf32, #tpu.memory_space<vmem>>, vector<1x32xf32>
      tpu.vector_store %arg9[%c0_42, %c0_43], %46 {strides = array<i32>} : memref<1x32xf32, #tpu.memory_space<vmem>>, vector<1x32xf32>,
      %cst_44 = arith.constant 0.000000e+00 : f32
      %48 = vector.broadcast %cst_44 : f32 to vector<2x16xf32>
      %c0_45 = arith.constant 0 : index
      %c0_46 = arith.constant 0 : index
      %49 = vector.load %arg10[%c0_45, %c0_46] : memref<2x16xf32, #tpu.memory_space<vmem>>, vector<2x16xf32>
      tpu.vector_store %arg10[%c0_45, %c0_46], %48 {strides = array<i32>} : memref<2x16xf32, #tpu.memory_space<vmem>>, vector<2x16xf32>,
    } else {
    }
    %c0 = arith.constant 0 : index
    %c0_1 = arith.constant 0 : index
    %3 = vector.load %arg1[%c0, %c0_1] : memref<8x32xbf16, #tpu.memory_space<vmem>>, vector<8x32xbf16>
    %c0_2 = arith.constant 0 : index
    %c0_3 = arith.constant 0 : index
    %4 = vector.load %arg3[%c0_2, %c0_3] : memref<8x32xbf16, #tpu.memory_space<vmem>>, vector<8x32xbf16>
    %cst = arith.constant dense<0.000000e+00> : vector<8x8xf32>
    %5 = tpu.matmul %3, %4, %cst {dimension_numbers = #tpu.dot_dimension_numbers<[1], [1], [0], [0], [0, 0, 1, 0], [], []>} : vector<8x32xbf16>, vector<8x32xbf16>, vector<8x8xf32> -> vector<8x8xf32>
    %c0_4 = arith.constant 0 : index
    %c0_5 = arith.constant 0 : index
    %6 = vector.load %arg4[%c0_4, %c0_5] : memref<32x8xbf16, #tpu.memory_space<vmem>>, vector<32x8xbf16>
    %7 = arith.extf %6 : vector<32x8xbf16> to vector<32x8xf32>
    %cst_6 = arith.constant dense<0.000000e+00> : vector<8x32xf32>
    %8 = tpu.matmul %5, %7, %cst_6 {dimension_numbers = #tpu.dot_dimension_numbers<[1], [1], [0], [0], [0, 0, 1, 0], [], []>} : vector<8x8xf32>, vector<32x8xf32>, vector<8x32xf32> -> vector<8x32xf32>
    %c0_7 = arith.constant 0 : index
    %c0_8 = arith.constant 0 : index
    %9 = vector.load %arg9[%c0_7, %c0_8] : memref<1x32xf32, #tpu.memory_space<vmem>>, vector<1x32xf32>
    %10 = arith.mulf %8, %8 : vector<8x32xf32>
    %cst_9 = arith.constant dense<0.000000e+00> : vector<32xf32>
    %11 = vector.multi_reduction <add>, %10, %cst_9 [0] : vector<8x32xf32> to vector<32xf32>
    %12 = vector.shape_cast %11 : vector<32xf32> to vector<1x32xf32>
    %13 = arith.addf %9, %12 : vector<1x32xf32>
    %c0_10 = arith.constant 0 : index
    %c0_11 = arith.constant 0 : index
    %14 = vector.load %arg9[%c0_10, %c0_11] : memref<1x32xf32, #tpu.memory_space<vmem>>, vector<1x32xf32>
    tpu.vector_store %arg9[%c0_10, %c0_11], %13 {strides = array<i32>} : memref<1x32xf32, #tpu.memory_space<vmem>>, vector<1x32xf32>,
    %c0_12 = arith.constant 0 : index
    %c0_13 = arith.constant 0 : index
    %c0_14 = arith.constant 0 : index
    %15 = vector.load %arg2[%c0_12, %c0_13, %c0_14] : memref<2x8x32xbf16, #tpu.memory_space<vmem>>, vector<1x8x32xbf16>
    %16 = vector.shape_cast %15 : vector<1x8x32xbf16> to vector<8x32xbf16>
    %c0_15 = arith.constant 0 : index
    %c0_16 = arith.constant 0 : index
    %c0_17 = arith.constant 0 : index
    %17 = vector.load %arg5[%c0_15, %c0_16, %c0_17] : memref<2x32x8xbf16, #tpu.memory_space<vmem>>, vector<1x32x8xbf16>
    %18 = vector.shape_cast %17 : vector<1x32x8xbf16> to vector<32x8xbf16>
    %cst_18 = arith.constant dense<0.000000e+00> : vector<8x8xf32>
    %19 = tpu.matmul %16, %18, %cst_18 {dimension_numbers = #tpu.dot_dimension_numbers<[1], [0], [0], [1], [0, 0, 1, 1], [], []>} : vector<8x32xbf16>, vector<32x8xbf16>, vector<8x8xf32> -> vector<8x8xf32>
    %c0_19 = arith.constant 0 : index
    %c0_20 = arith.constant 0 : index
    %c0_21 = arith.constant 0 : index
    %20 = vector.load %arg6[%c0_19, %c0_20, %c0_21] : memref<2x8x16xbf16, #tpu.memory_space<vmem>>, vector<1x8x16xbf16>
    %21 = vector.shape_cast %20 : vector<1x8x16xbf16> to vector<8x16xbf16>
    %22 = arith.extf %21 : vector<8x16xbf16> to vector<8x16xf32>
    %cst_22 = arith.constant dense<0.000000e+00> : vector<8x16xf32>
    %23 = tpu.matmul %19, %22, %cst_22 {dimension_numbers = #tpu.dot_dimension_numbers<[1], [0], [0], [1], [0, 0, 1, 1], [], []>} : vector<8x8xf32>, vector<8x16xf32>, vector<8x16xf32> -> vector<8x16xf32>
    %c1 = arith.constant 1 : index
    %c0_23 = arith.constant 0 : index
    %c0_24 = arith.constant 0 : index
    %24 = vector.load %arg2[%c1, %c0_23, %c0_24] : memref<2x8x32xbf16, #tpu.memory_space<vmem>>, vector<1x8x32xbf16>
    %25 = vector.shape_cast %24 : vector<1x8x32xbf16> to vector<8x32xbf16>
    %c1_25 = arith.constant 1 : index
    %c0_26 = arith.constant 0 : index
    %c0_27 = arith.constant 0 : index
    %26 = vector.load %arg5[%c1_25, %c0_26, %c0_27] : memref<2x32x8xbf16, #tpu.memory_space<vmem>>, vector<1x32x8xbf16>
    %27 = vector.shape_cast %26 : vector<1x32x8xbf16> to vector<32x8xbf16>
    %cst_28 = arith.constant dense<0.000000e+00> : vector<8x8xf32>
    %28 = tpu.matmul %25, %27, %cst_28 {dimension_numbers = #tpu.dot_dimension_numbers<[1], [0], [0], [1], [0, 0, 1, 1], [], []>} : vector<8x32xbf16>, vector<32x8xbf16>, vector<8x8xf32> -> vector<8x8xf32>
    %c1_29 = arith.constant 1 : index
    %c0_30 = arith.constant 0 : index
    %c0_31 = arith.constant 0 : index
    %29 = vector.load %arg6[%c1_29, %c0_30, %c0_31] : memref<2x8x16xbf16, #tpu.memory_space<vmem>>, vector<1x8x16xbf16>
    %30 = vector.shape_cast %29 : vector<1x8x16xbf16> to vector<8x16xbf16>
    %31 = arith.extf %30 : vector<8x16xbf16> to vector<8x16xf32>
    %cst_32 = arith.constant dense<0.000000e+00> : vector<8x16xf32>
    %32 = tpu.matmul %28, %31, %cst_32 {dimension_numbers = #tpu.dot_dimension_numbers<[1], [0], [0], [1], [0, 0, 1, 1], [], []>} : vector<8x8xf32>, vector<8x16xf32>, vector<8x16xf32> -> vector<8x16xf32>
    %c0_33 = arith.constant 0 : index
    %c0_34 = arith.constant 0 : index
    %33 = vector.load %arg10[%c0_33, %c0_34] : memref<2x16xf32, #tpu.memory_space<vmem>>, vector<2x16xf32>
    %34 = arith.mulf %23, %23 : vector<8x16xf32>
    %cst_35 = arith.constant dense<0.000000e+00> : vector<16xf32>
    %35 = vector.multi_reduction <add>, %34, %cst_35 [0] : vector<8x16xf32> to vector<16xf32>
    %36 = vector.shape_cast %35 : vector<16xf32> to vector<1x16xf32>
    %37 = arith.mulf %32, %32 : vector<8x16xf32>
    %cst_36 = arith.constant dense<0.000000e+00> : vector<16xf32>
    %38 = vector.multi_reduction <add>, %37, %cst_36 [0] : vector<8x16xf32> to vector<16xf32>
    %39 = vector.shape_cast %38 : vector<16xf32> to vector<1x16xf32>
    %40 = tpu.concatenate %36, %39 in 0 : vector<1x16xf32>, vector<1x16xf32> -> vector<2x16xf32>
    %41 = arith.addf %33, %40 : vector<2x16xf32>
    %c0_37 = arith.constant 0 : index
    %c0_38 = arith.constant 0 : index
    %42 = vector.load %arg10[%c0_37, %c0_38] : memref<2x16xf32, #tpu.memory_space<vmem>>, vector<2x16xf32>
    tpu.vector_store %arg10[%c0_37, %c0_38], %41 {strides = array<i32>} : memref<2x16xf32, #tpu.memory_space<vmem>>, vector<2x16xf32>,
    %c0_i32_39 = arith.constant 0 : i32
    %43 = arith.cmpi eq, %arg0, %c0_i32_39 : i32
    %44 = arith.extui %43 : i1 to i32
    %c0_i32_40 = arith.constant 0 : i32
    %45 = arith.cmpi ne, %44, %c0_i32_40 : i32
    scf.if %45 {
      %c0_41 = arith.constant 0 : index
      %c0_42 = arith.constant 0 : index
      %46 = vector.load %arg9[%c0_41, %c0_42] : memref<1x32xf32, #tpu.memory_space<vmem>>, vector<1x32xf32>
      %47 = math.sqrt %46 : vector<1x32xf32>
      %c0_43 = arith.constant 0 : index
      %c0_44 = arith.constant 0 : index
      %48 = vector.load %arg7[%c0_43, %c0_44] : memref<1x32xf32, #tpu.memory_space<vmem>>, vector<1x32xf32>
      tpu.vector_store %arg7[%c0_43, %c0_44], %47 {strides = array<i32>} : memref<1x32xf32, #tpu.memory_space<vmem>>, vector<1x32xf32>,
      %c0_45 = arith.constant 0 : index
      %c0_46 = arith.constant 0 : index
      %49 = vector.load %arg10[%c0_45, %c0_46] : memref<2x16xf32, #tpu.memory_space<vmem>>, vector<2x16xf32>
      %50 = math.sqrt %49 : vector<2x16xf32>
      %c0_47 = arith.constant 0 : index
      %c0_48 = arith.constant 0 : index
      %51 = vector.load %arg8[%c0_47, %c0_48] : memref<2x16xf32, #tpu.memory_space<vmem>>, vector<2x16xf32>
      tpu.vector_store %arg8[%c0_47, %c0_48], %50 {strides = array<i32>} : memref<2x16xf32, #tpu.memory_space<vmem>>, vector<2x16xf32>,
    } else {
    }
    return
  }
  func.func @transform_0(%arg0: i32) -> (i32, i32) {
    %c0_i32 = arith.constant 0 : i32
    %c0_i32_0 = arith.constant 0 : i32
    return %arg0, %c0_i32 : i32, i32
  }
  func.func @transform_1(%arg0: i32) -> (i32, i32, i32) {
    %c0_i32 = arith.constant 0 : i32
    %c0_i32_0 = arith.constant 0 : i32
    %c0_i32_1 = arith.constant 0 : i32
    return %c0_i32, %arg0, %c0_i32_0 : i32, i32, i32
  }
  func.func @transform_2(%arg0: i32) -> (i32, i32) {
    %c0_i32 = arith.constant 0 : i32
    %c0_i32_0 = arith.constant 0 : i32
    %c0_i32_1 = arith.constant 0 : i32
    return %c0_i32, %c0_i32_0 : i32, i32
  }
  func.func @transform_3(%arg0: i32) -> (i32, i32) {
    %c0_i32 = arith.constant 0 : i32
    %c0_i32_0 = arith.constant 0 : i32
    %c0_i32_1 = arith.constant 0 : i32
    return %c0_i32, %c0_i32_0 : i32, i32
  }
  func.func @transform_4(%arg0: i32) -> (i32, i32, i32) {
    %c0_i32 = arith.constant 0 : i32
    %c0_i32_0 = arith.constant 0 : i32
    %c0_i32_1 = arith.constant 0 : i32
    %c0_i32_2 = arith.constant 0 : i32
    return %c0_i32, %c0_i32_0, %c0_i32_1 : i32, i32, i32
  }
  func.func @transform_5(%arg0: i32) -> (i32, i32, i32) {
    %c0_i32 = arith.constant 0 : i32
    %c0_i32_0 = arith.constant 0 : i32
    %c0_i32_1 = arith.constant 0 : i32
    %c0_i32_2 = arith.constant 0 : i32
    return %c0_i32, %c0_i32_0, %c0_i32_1 : i32, i32, i32
  }
  func.func @transform_6(%arg0: i32) -> (i32, i32) {
    %c0_i32 = arith.constant 0 : i32
    %c0_i32_0 = arith.constant 0 : i32
    %c0_i32_1 = arith.constant 0 : i32
    return %c0_i32, %c0_i32_0 : i32, i32
  }
  func.func @transform_7(%arg0: i32) -> (i32, i32) {
    %c0_i32 = arith.constant 0 : i32
    %c0_i32_0 = arith.constant 0 : i32
    %c0_i32_1 = arith.constant 0 : i32
    return %c0_i32, %c0_i32_0 : i32, i32
  }
}

</mosaic_0001>

<bundles_post_ra>
// kernel: squeeze.5
= control target key start
LH: loop header
LB: loop body
LE: loop exit
PB: predicated region body
PF: predicated region fallthrough
CT: control target
= control target key end

     0   :  { %vm7_vm0 = vcmask 130048   ;;  %s39_s0 = inlined_call_operand.vmem [shape: f32[32], index: 0, kind: input, shape index: {}]   ;;  %s40_s1 = inlined_call_operand.vmem [shape: f32[2,16], index: 1, kind: output, shape index: {}]  }
   0x1   :  { %v4_v0 = vld [vmem:[%s39_s0] sm:$0x1]  ;;  %s22_s0 = smov 112  }
   0x2   :  { %5 = vst [vmem:[#allocation1] sm:$0x1] %v4_v0 }
   0x9   :  { %v9_v1 = vld [vmem:[#allocation1] sm:$0x1]  }
   0xa   :  { %v6_v2 = vld [vmem:[#allocation1] sm:$0x1]   ;;  %10 = vrot.lane.b32.xlu0 %v9_v1, %s22_s0 }
   0xb   :  { %8 = vst.msk [vmem:[#allocation0] sm:$0x1] %vm7_vm0, %v6_v2  }
  0x7c   :  { %v11_v3 = vpop.permute.xlu0 %10  }
  0x7d   :  { %14 = vst.msk [vmem:[#allocation0 + $0x1] sm:$0x1] %vm7_vm0, %v11_v3  }
  0x84   :  { %v18_v4 = vld [vmem:[#allocation0] sm:$0x3] }
  0x85   :  { %20 = vst [vmem:[%s40_s1] sm:$0x3] %v18_v4 }

// kernel: qkvo_fused_gqa_predictor.1
= control target key start
LH: loop header
LB: loop body
LE: loop exit
PB: predicated region body
PF: predicated region fallthrough
CT: control target
= control target key end

     0   :  { %vm36_vm0 = vcmask 261120   ;;  %v622_v0 = vmov 0.0   ;;  %vm623_vm1 = vmmov 0   ;;  %v624_v3 = vmov 0.0|0.0   ;;  %s743_s2 = inlined_call_operand.vmem [shape: bf16[8,32], index: 2, kind: input, shape index: {}]   ;;  %s744_s4 = inlined_call_operand.vmem [shape: bf16[2,32,8], index: 4, kind: input, shape index: {}]   ;;  %s745_s3 = inlined_call_operand.vmem [shape: bf16[32,8], index: 3, kind: input, shape index: {}]   ;;  %s746_s0 = inlined_call_operand.vmem [shape: bf16[8,32], index: 0, kind: input, shape index: {}]   ;;  %s747_s1 = inlined_call_operand.vmem [shape: bf16[2,8,32], index: 1, kind: input, shape index: {}]   ;;  %s748_s5 = inlined_call_operand.vmem [shape: bf16[2,8,16], index: 5, kind: input, shape index: {}]   ;;  %s749_s6 = inlined_call_operand.vmem [shape: f32[1,32], index: 6, kind: output, shape index: {0}]   ;;  %s750_s7 = inlined_call_operand.vmem [shape: f32[2,16], index: 7, kind: output, shape index: {1}]  }
   0x1   :  { %560 = vmatprep.subr.bf16.mxu0 %v622_v0  ;;  %v35_v1 = vld [vmem:[%s743_s2] sm:$0xf]  ;;  %562 = vmatprep.mubr.msk.bf16.mxu0 %vm623_vm1, %v622_v0  ;;  %vm91_vm2 = vcmask 64512   ;;  %v615_v7 = vld [vmem:[%s744_s4 + $0x8] sm:$0xff]   ;;  %v616_v10 = vld [vmem:[%s744_s4 + $0x10] sm:$0xff]   ;;  %vm30_vm4 = vcmask 253952  }
   0x2   :  { %v41_v2 = vsel %vm36_vm0, %v35_v1, 0  ;;  %603 = vmatprep.subr.bf16.mxu1 %v624_v3  ;;  %574 = vmatprep.mubr.msk.f32.mxu1 %vm623_vm1, %v622_v0  ;;  %v535_v4 = vld [vmem:[%s745_s3] sm:$0xff]   ;;  %vm605_vm3 = vmpackc.low %vm91_vm2, %vm91_vm2  ;;  %v542_v8 = vld [vmem:[%s745_s3 + $0x8] sm:$0xff]   ;;  %31 = vst.msk [vmem:[#allocation2] sm:$0x1] %vm30_vm4, %v622_v0  ;;  %vm32_vm5 = vcmask 123904  }
   0x3   :  { %561 = vmatpush3.bf16.xpose.msra.mxu0 %v41_v2  ;;  %v34_v5 = vld [vmem:[%s746_s0] sm:$0xf]  ;;  %606 = vmatpush3.bf16.xpose.msk.msra.mxu1 %vm605_vm3, %v535_v4  ;;  %v617_v11 = vld [vmem:[%s744_s4 + $0x18] sm:$0xff]   ;;  %v524_v12 = vld [vmem:[%s747_s1 + $0x4] sm:$0xf]  ;;  %vm464_vm6 = vcmask 130048  }
   0x4   :  { %577 = vmatprep.subr.bf16.mxu0 %v622_v0  ;;  %v614_v6 = vld [vmem:[%s744_s4] sm:$0xff]   ;;  %607 = vmatprep.subr.bf16.mxu1 %v624_v3  ;;  %33 = vst.msk [vmem:[#allocation3] sm:$0x3] %vm32_vm5, %v622_v0  ;;  %vm480_vm7 = vcmask 1040384  }
   0x5   :  { %v189_v9 = vld [vmem:[%s747_s1] sm:$0xf] }
   0x6   :  { %v249_v13 = vld [vmem:[%s748_s5] sm:$0xff]  }
   0x7   :  { %v250_v14 = vunpack.c.l.bf16 %v249_v13  ;;  %v388_v19 = vunpack.c.h.bf16 %v249_v13 }
   0x9   :  { %v177_v42 = vld [vmem:[#allocation2] sm:$0x1] }
   0xa   :  { %563 = vmatmul.mubr.msk.bf16.vlgmr.msra.gmra.mrb[0].mxu0 %vm36_vm0, %v34_v5 }
   0xb   :  { %578 = vmatpush3.bf16.msra.mxu0 %v614_v6  ;;  %581 = vmatprep.mubr.msk.bf16.mxu0 %vm623_vm1, %v622_v0  ;;  %v462_v60 = vld [vmem:[#allocation3] sm:$0x3] }
   0xc   :  { %579 = vmatprep.subr.bf16.mxu0 %v622_v0  ;;  %610 = vmatpush3.bf16.xpose.msk.msra.mxu1 %vm605_vm3, %v542_v8 }
   0xd   :  { %585 = vmatprep.subr.mxu1 %v622_v0 }
   0xf   :  { %580 = vmatpush3.bf16.msra.mxu0 %v615_v7 }
  0x10   :  { %590 = vmatprep.subr.bf16.mxu0 %v622_v0 }
  0x12   :  { %582 = vmatmul.mubr.msk.bf16.vlgmr.msra.gmra.mrb[4].mxu0 %vm36_vm0, %v189_v9 }
  0x13   :  { %591 = vmatpush3.bf16.msra.mxu0 %v616_v10  ;;  %594 = vmatprep.mubr.msk.bf16.mxu0 %vm623_vm1, %v622_v0 }
  0x14   :  { %592 = vmatprep.subr.bf16.mxu0 %v622_v0 }
  0x17   :  { %593 = vmatpush3.bf16.msra.mxu0 %v617_v11 }
  0x1a   :  { %595 = vmatmul.mubr.msk.bf16.vlgmr.msra.gmra.mrb[8].mxu0 %vm36_vm0, %v524_v12 }
  0xdd   :  { %v77_v15 = vpop.f32.mrb[0].mxu0 }
  0xde   :  { %v564_v16 = vpop.f32.mrb[1].mxu0  ;;  %575 = vmatmul.mubr.msk.f32.vlgmr.msra.gmra.mrb[0].mxu1 %vm91_vm2, %v77_v15 }
  0xdf   :  { %v80_v17 = vpop.f32.mrb[2].mxu0  ;;  %586 = vmatpush3.msra.mxu1 %v250_v14  ;;  %587 = vmatprep.mubr.msk.f32.mxu1 %vm623_vm1, %v622_v0 }
  0xe0   :  { %v565_v18 = vpop.f32.mrb[3].mxu0  ;;  %598 = vmatprep.subr.mxu1 %v622_v0 }
  0xe5   :  { %v243_v20 = vpop.f32.mrb[4].mxu0 }
  0xe6   :  { %v583_v21 = vpop.f32.mrb[5].mxu0  ;;  %588 = vmatmul.mubr.msk.f32.vlgmr.msra.gmra.mrb[2].mxu1 %vm91_vm2, %v243_v20 }
  0xe7   :  { %v246_v22 = vpop.f32.mrb[6].mxu0  ;;  %599 = vmatpush3.msra.mxu1 %v388_v19  ;;  %600 = vmatprep.mubr.msk.f32.mxu1 %vm623_vm1, %v622_v0 }
  0xe8   :  { %v584_v23 = vpop.f32.mrb[7].mxu0 }
  0xed   :  { %v380_v24 = vpop.f32.mrb[8].mxu0 }
  0xee   :  { %v596_v25 = vpop.f32.mrb[9].mxu0  ;;  %601 = vmatmul.mubr.msk.f32.vlgmr.msra.gmra.mrb[4].mxu1 %vm91_vm2, %v380_v24 }
  0xef   :  { %v383_v26 = vpop.f32.mrb[10].mxu0 }
  0xf0   :  { %v597_v27 = vpop.f32.mrb[11].mxu0 }
 0x1b1   :  { %v173_v28 = vpop.f32.mrb[0].mxu1 }
 0x1b2   :  { %v178_v29 = vmul.f32 %v173_v28, %v173_v28  ;;  %v576_v30 = vpop.f32.mrb[1].mxu1 }
 0x1b4   :  { %v179_v31 = vsel %vm36_vm0, %v178_v29, 0.0 }
 0x1b5   :  { %v180_v32 = vrot.slane %v179_v31, 4 }
 0x1b7   :  { %v181_v33 = vadd.f32 %v180_v32, %v179_v31 }
 0x1b9   :  { %v182_v34 = vrot.slane %v181_v33, 2  ;;  %v320_v35 = vpop.f32.mrb[2].mxu1 }
 0x1ba   :  { %v463_v36 = vmul.f32 %v320_v35, %v320_v35  ;;  %v589_v37 = vpop.f32.mrb[3].mxu1 }
 0x1bb   :  { %v183_v38 = vadd.f32 %v182_v34, %v181_v33 }
 0x1bc   :  { %v465_v39 = vsel %vm464_vm6, %v463_v36, 0.0 }
 0x1bd   :  { %v184_v40 = vrot.slane %v183_v38, 1  ;;  %v466_v41 = vrot.slane %v465_v39, 4 }
 0x1bf   :  { %v185_v43 = vadd.f32 %v184_v40, %v183_v38  ;;  %v467_v44 = vadd.f32 %v466_v41, %v465_v39 }
 0x1c1   :  { %v186_v45 = vadd.f32 %v185_v43, %v177_v42  ;;  %v458_v46 = vpop.f32.mrb[4].mxu1  ;;  %v468_v49 = vrot.slane %v467_v44, 2 }
 0x1c2   :  { %v472_v47 = vmul.f32 %v458_v46, %v458_v46  ;;  %v602_v48 = vpop.f32.mrb[5].mxu1 }
 0x1c3   :  { %188 = vst.msk [vmem:[#allocation2] sm:$0x1] %vm30_vm4, %v186_v45  ;;  %v469_v53 = vadd.f32 %v468_v49, %v467_v44 }
 0x1c4   :  { %v473_v50 = vsel %vm464_vm6, %v472_v47, 0.0 }
 0x1c5   :  { %v474_v51 = vrot.slane %v473_v50, 4  ;;  %v470_v56 = vrot.slane %v469_v53, 1 }
 0x1c7   :  { %v475_v52 = vadd.f32 %v474_v51, %v473_v50  ;;  %v471_v59 = vadd.f32 %v470_v56, %v469_v53 }
 0x1c9   :  { %v476_v54 = vrot.slane %v475_v52, 2 }
 0x1ca   :  { %v488_v55 = vld [vmem:[#allocation2] sm:$0x1] }
 0x1cb   :  { %618 = vrsqrt.f32 %v488_v55  ;;  %v477_v57 = vadd.f32 %v476_v54, %v475_v52  ;;  %vm491_vm8 = vcmp.eq.f32.partialorder %v488_v55, inf  ;;  %v494_v2 = vand.u32 2147483648, %v488_v55 }
 0x1cc   :  { %vm493_vm9 = vcmp.eq.f32.partialorder %v488_v55, 0.0 }
 0x1cd   :  { %v478_v58 = vrot.slane %v477_v57, 1 }
 0x1cf   :  { %v479_v61 = vadd.f32 %v478_v58, %v477_v57 }
 0x1d1   :  { %v481_v62 = vsel %vm480_vm7, %v471_v59, %v479_v61 }
 0x1d2   :  { %v482_v63 = vadd.f32 %v481_v62, %v462_v60 }
 0x1d4   :  { %484 = vst.msk [vmem:[#allocation3] sm:$0x3] %vm32_vm5, %v482_v63 }
 0x1d5   :  { %v619_v0 = vpop.eup %618 }
 0x1d6   :  { %v490_v1 = vmul.f32 %v619_v0, %v488_v55 }
 0x1d8   :  { %v492_v3 = vsel %vm491_vm8, %v488_v55, %v490_v1 }
 0x1d9   :  { %v495_v4 = vsel %vm493_vm9, %v494_v2, %v492_v3 }
 0x1da   :  { %496 = vst.msk [vmem:[%s749_s6] sm:$0x1] %vm30_vm4, %v495_v4 }
 0x1db   :  { %v497_v5 = vld [vmem:[#allocation3] sm:$0x3] }
 0x1dc   :  { %620 = vrsqrt.f32 %v497_v5  ;;  %vm500_vm10 = vcmp.eq.f32.partialorder %v497_v5, inf  ;;  %v503_v8 = vand.u32 2147483648, %v497_v5  ;;  %vm502_vm11 = vcmp.eq.f32.partialorder %v497_v5, 0.0 }
 0x1e6   :  { %v621_v6 = vpop.eup %620 }
 0x1e7   :  { %v499_v7 = vmul.f32 %v621_v6, %v497_v5 }
 0x1e9   :  { %v501_v9 = vsel %vm500_vm10, %v497_v5, %v499_v7 }
 0x1ea   :  { %v504_v10 = vsel %vm502_vm11, %v503_v8, %v501_v9 }
 0x1eb   :  { %505 = vst.msk [vmem:[%s750_s7] sm:$0x3] %vm32_vm5, %v504_v10 }

</bundles_post_ra>
